<compile_context>
chip_gen: v5e
topology: v5e:2x2
jax: 0.10.0
libtpu: 0.0.40
codegen_flags: <defaults>
</compile_context>

<pallas_src>
import functools

import jax
import jax.numpy as jnp
from jax import lax
from jax.experimental import pallas as pl
from jax.experimental.pallas import tpu as pltpu

_LOG_CLAMP = -100.0  # nn.BCELoss clamps log(x) at -100


def _round_up(x, m):
    return ((x + m - 1) // m) * m


def _measure_loss_kernel(y_col_ref, y_row_ref, d_ref, out_ref, *,
                         n, group, groups, row_tile, col_tile, need_mask):
    """One (row_tile, col_tile) tile of the (N, N) similarity matrix ->
    (group, col_tile) lane-dense partial sums."""
    row_base = pl.program_id(0) * row_tile
    col_base = pl.program_id(1) * col_tile
    y_row = y_row_ref[...]                                        # (1, col_tile)

    def tile(masked):
        if masked:
            col_ids = lax.broadcasted_iota(jnp.int32, (1, col_tile), 1)
            valid_col = (col_base + col_ids) < n                  # (1, col_tile)
        acc = jnp.zeros((group, col_tile), jnp.float32)
        for g in range(groups):                                   # static unroll
            r0 = g * group                                        # static, group-aligned
            d = d_ref[pl.ds(r0, group), :].astype(jnp.float32)    # (group, col_tile)
            y_c = y_col_ref[pl.ds(r0, group), :]                  # (group, 1)
            eq = y_c == y_row                                     # (group, col_tile) bool
            # single log per element; BCELoss clamp at -100
            log_sel = jnp.maximum(jnp.log(jnp.where(eq, d, 1.0 - d)), _LOG_CLAMP)
            contrib = jnp.where(eq, 50.0 - log_sel, -0.5 * log_sel)
            if masked:
                row_ids = lax.broadcasted_iota(jnp.int32, (group, 1), 0)
                valid = jnp.logical_and((row_base + r0 + row_ids) < n, valid_col)
                contrib = jnp.where(valid, contrib, 0.0)          # OOB garbage -> 0
            acc = acc + contrib
        out_ref[...] = acc

    if need_mask:
        # Only edge tiles pay the iota/mask cost; interior tiles take the plain path.
        is_edge = jnp.logical_or(row_base + row_tile > n, col_base + col_tile > n)
        pl.when(is_edge)(lambda: tile(True))
        pl.when(jnp.logical_not(is_edge))(lambda: tile(False))
    else:
        tile(False)


def _vmem_cap_bytes():
    # ~75% of per-core VMEM; safe fallback of 48 MiB covers v7x (64 MiB/TC).
    try:
        cap = getattr(pltpu.get_tpu_info(), "vmem_capacity_bytes", None)
        if cap:
            return int(0.75 * cap)
    except Exception:
        pass
    return 48 * 1024 * 1024


def measure_loss(digits, y, *, row_tile=None, col_tile=None):
    """Pallas implementation of MeasureLoss.forward(digits, y). Returns a scalar f32."""
    yf = jnp.reshape(y, (-1,)).astype(jnp.float32)
    n = yf.shape[0]
    assert n > 0 and digits.shape == (n, n), "digits must be (N, N) with N = y.size"

    # Stream digits in their producer dtype when it is a <=32-bit float (bf16 stays
    # 2 B/elem on HBM); f64 / ints are cast to f32 in the wrapper.
    if digits.dtype in (jnp.float32, jnp.bfloat16, jnp.float16):
        d = digits
    else:
        d = digits.astype(jnp.float32)
    itemsize = jnp.dtype(d.dtype).itemsize
    group = 8 * (4 // itemsize)            # 8 rows for f32, 16 for bf16/f16 (native tiling)

    nc = _round_up(n, 128)
    # ---- column tile (lane dim, multiple of 128) ----
    if col_tile is None:
        col_tile = min(nc, 1024)
    else:
        col_tile = max(128, (min(int(col_tile), nc) // 128) * 128)
    num_col_tiles = pl.cdiv(n, col_tile)
    # ---- row tile (sublane dim, multiple of `group`) ----
    if row_tile is None:
        row_tile = 256
    row_tile = max(group, (min(int(row_tile), 1024) // group) * group)
    if num_col_tiles == 1 and n > group:
        # guarantee >= 2 grid steps so both v7x TensorCores get work
        row_tile = min(row_tile, _round_up(pl.cdiv(n, 2), group))
    row_tile = max(group, min(row_tile, _round_up(n, group)))
    num_row_tiles = pl.cdiv(n, row_tile)

    need_mask = (n % row_tile != 0) or (n % col_tile != 0)

    y_col = yf.reshape(n, 1)               # labels as a column (O(N), cheap)
    y_row = yf.reshape(1, n)               # labels as a row

    kernel = functools.partial(
        _measure_loss_kernel,
        n=n, group=group, groups=row_tile // group,
        row_tile=row_tile, col_tile=col_tile, need_mask=need_mask)

    block_bytes = row_tile * col_tile * itemsize
    vmem_limit = int(min(_vmem_cap_bytes(),
                         max(32 * 1024 * 1024, 8 * block_bytes)))

    covered = (num_row_tiles * row_tile) * (num_col_tiles * col_tile)
    cost = pl.CostEstimate(
        flops=8 * covered,
        transcendentals=covered,
        bytes_accessed=n * n * itemsize + 2 * n * 4
        + num_row_tiles * group * num_col_tiles * col_tile * 4,
    )

    partials = pl.pallas_call(
        kernel,
        out_shape=jax.ShapeDtypeStruct(
            (num_row_tiles * group, num_col_tiles * col_tile), jnp.float32),
        grid_spec=pltpu.PrefetchScalarGridSpec(
            num_scalar_prefetch=0,
            grid=(num_row_tiles, num_col_tiles),
            in_specs=[
                pl.BlockSpec((row_tile, 1), lambda i, j: (i, 0)),         # labels (column)
                pl.BlockSpec((1, col_tile), lambda i, j: (0, j)),         # labels (row)
                pl.BlockSpec((row_tile, col_tile), lambda i, j: (i, j)),  # digits tile
            ],
            out_specs=pl.BlockSpec((group, col_tile), lambda i, j: (i, j)),
        ),
        compiler_params=pltpu.CompilerParams(
            dimension_semantics=("parallel", "parallel"),
            vmem_limit_bytes=vmem_limit,
        ),
        cost_estimate=cost,
    )(y_col, y_row, d)

    # mean(l1) + 0.5*mean(l2) == sum(l1 + 0.5*l2) / N^2; masked elements contribute 0.
    # Divide twice to avoid f32 rounding of N*N for large N.
    return jnp.sum(partials) / jnp.float32(n) / jnp.float32(n)


def measure_loss_ref(digits, y):
    """Plain-JAX reference matching nn.BCELoss semantics (log clamped at -100)."""
    yf = jnp.reshape(y, (-1,)).astype(jnp.float32)
    eq = (yf[:, None] == yf[None, :]).astype(jnp.float32)
    x = digits.astype(jnp.float32)

    def bce(p, t):
        lx = jnp.maximum(jnp.log(p), _LOG_CLAMP)
        l1x = jnp.maximum(jnp.log(1.0 - p), _LOG_CLAMP)
        return jnp.mean(-(t * lx + (1.0 - t) * l1x))

    return bce(x * eq, eq) + 0.5 * bce(x * (1.0 - eq), eq)


if __name__ == "__main__":
    key = jax.random.PRNGKey(0)
    k_d, k_y = jax.random.split(key)

    # 1) Unaligned N: row + column edge masking, default auto tiles (2x1 grid).
    N = 72
    digits = jax.nn.sigmoid(jax.random.normal(k_d, (N, N), dtype=jnp.float32))
    y = jax.random.randint(k_y, (N,), 0, 4).astype(jnp.float32)
    ref = measure_loss_ref(digits, y)
    out = jax.block_until_ready(measure_loss(digits, y))
    assert jnp.allclose(out, ref, rtol=1e-4, atol=1e-4), (float(out), float(ref))

    # 2) Mixed interior (unmasked fast path) + edge (masked) tiles on a multi-tile grid.
    N2 = 200
    d2 = jax.nn.sigmoid(jax.random.normal(k_d, (N2, N2), dtype=jnp.float32))
    y2 = jax.random.randint(k_y, (N2,), 0, 4).astype(jnp.float32)
    ref2 = measure_loss_ref(d2, y2)
    out2 = jax.block_until_ready(measure_loss(d2, y2, row_tile=64, col_tile=128))
    assert jnp.allclose(out2, ref2, rtol=1e-4, atol=1e-4), (float(out2), float(ref2))

    # 3) Aligned N: need_mask=False path (no iota/masking compiled in).
    N3 = 256
    d3 = jax.nn.sigmoid(jax.random.normal(k_d, (N3, N3), dtype=jnp.float32))
    y3 = jax.random.randint(k_y, (N3,), 0, 4).astype(jnp.float32)
    ref3 = measure_loss_ref(d3, y3)
    out3 = jax.block_until_ready(measure_loss(d3, y3))
    assert jnp.allclose(out3, ref3, rtol=1e-4, atol=1e-4), (float(out3), float(ref3))

    # 4) bf16 digits streamed natively (16-row groups, in-kernel upcast per group).
    d_bf16 = digits.astype(jnp.bfloat16)
    ref_bf16 = measure_loss_ref(d_bf16, y)
    out4 = jax.block_until_ready(measure_loss(d_bf16, y))
    assert jnp.allclose(out4, ref_bf16, rtol=1e-4, atol=1e-4), (float(out4), float(ref_bf16))

    print("KERNEL_OK")
</pallas_src>

<mosaic_0001>
module attributes {stable_mosaic.version = 11 : i64} {
  func.func @_measure_loss_kernel(%arg0: i32, %arg1: i32, %arg2: memref<40x1xf32, #tpu.memory_space<vmem>>, %arg3: memref<1x128xf32, #tpu.memory_space<vmem>>, %arg4: memref<40x128xf32, #tpu.memory_space<vmem>>, %arg5: memref<8x128xf32, #tpu.memory_space<vmem>>) attributes {dimension_semantics = [#tpu.dimension_semantics<parallel>, #tpu.dimension_semantics<parallel>], iteration_bounds = array<i64: 2, 1>, scalar_prefetch = 0 : i64, scratch_operands = 0 : i64, tpu.core_type = #tpu.core_type<tc>, window_params = [{transform_indices = @transform_0, window_bounds = array<i64: 40, 1>}, {transform_indices = @transform_1, window_bounds = array<i64: 1, 128>}, {transform_indices = @transform_2, window_bounds = array<i64: 40, 128>}, {transform_indices = @transform_3, window_bounds = array<i64: 8, 128>}]} {
    %c40_i32 = arith.constant 40 : i32
    %0 = arith.muli %arg0, %c40_i32 : i32
    %c128_i32 = arith.constant 128 : i32
    %1 = arith.muli %arg1, %c128_i32 : i32
    %c0 = arith.constant 0 : index
    %c0_0 = arith.constant 0 : index
    %2 = vector.load %arg3[%c0, %c0_0] : memref<1x128xf32, #tpu.memory_space<vmem>>, vector<1x128xf32>
    %c40_i32_1 = arith.constant 40 : i32
    %3 = arith.addi %0, %c40_i32_1 : i32
    %c72_i32 = arith.constant 72 : i32
    %4 = arith.cmpi sgt, %3, %c72_i32 : i32
    %c128_i32_2 = arith.constant 128 : i32
    %5 = arith.addi %1, %c128_i32_2 : i32
    %c72_i32_3 = arith.constant 72 : i32
    %6 = arith.cmpi sgt, %5, %c72_i32_3 : i32
    %7 = arith.ori %4, %6 : i1
    %8 = arith.extui %7 : i1 to i32
    %c0_i32 = arith.constant 0 : i32
    %9 = arith.cmpi ne, %8, %c0_i32 : i32
    scf.if %9 {
      %13 = tpu.iota {dimensions = array<i32: 1>} : vector<1x128xi32>
      %14 = vector.broadcast %1 : i32 to vector<1x128xi32>
      %15 = arith.addi %14, %13 : vector<1x128xi32>
      %c72_i32_5 = arith.constant 72 : i32
      %16 = vector.broadcast %c72_i32_5 : i32 to vector<1x128xi32>
      %17 = arith.cmpi slt, %15, %16 : vector<1x128xi32>
      %cst = arith.constant 0.000000e+00 : f32
      %18 = vector.broadcast %cst : f32 to vector<8x128xf32>
      %c0_6 = arith.constant 0 : index
      %c0_7 = arith.constant 0 : index
      %19 = vector.load %arg4[%c0_6, %c0_7] : memref<40x128xf32, #tpu.memory_space<vmem>>, vector<8x128xf32>
      %c0_8 = arith.constant 0 : index
      %c0_9 = arith.constant 0 : index
      %20 = vector.load %arg2[%c0_8, %c0_9] : memref<40x1xf32, #tpu.memory_space<vmem>>, vector<8x1xf32>
      %21 = vector.broadcast %20 : vector<8x1xf32> to vector<8x128xf32>
      %22 = vector.broadcast %2 : vector<1x128xf32> to vector<8x128xf32>
      %23 = arith.cmpf oeq, %21, %22 : vector<8x128xf32>
      %cst_10 = arith.constant 1.000000e+00 : f32
      %24 = vector.broadcast %cst_10 : f32 to vector<8x128xf32>
      %25 = arith.subf %24, %19 : vector<8x128xf32>
      %26 = arith.select %23, %19, %25 : vector<8x128xi1>, vector<8x128xf32>
      %27 = math.log %26 : vector<8x128xf32>
      %cst_11 = arith.constant -1.000000e+02 : f32
      %28 = vector.broadcast %cst_11 : f32 to vector<8x128xf32>
      %29 = arith.maximumf %27, %28 : vector<8x128xf32>
      %cst_12 = arith.constant 5.000000e+01 : f32
      %30 = vector.broadcast %cst_12 : f32 to vector<8x128xf32>
      %31 = arith.subf %30, %29 : vector<8x128xf32>
      %cst_13 = arith.constant -5.000000e-01 : f32
      %32 = vector.broadcast %cst_13 : f32 to vector<8x128xf32>
      %33 = arith.mulf %32, %29 : vector<8x128xf32>
      %34 = arith.select %23, %31, %33 : vector<8x128xi1>, vector<8x128xf32>
      %35 = tpu.iota {dimensions = array<i32: 0>} : vector<8x1xi32>
      %c0_i32_14 = arith.constant 0 : i32
      %36 = arith.addi %0, %c0_i32_14 : i32
      %37 = vector.broadcast %36 : i32 to vector<8x1xi32>
      %38 = arith.addi %37, %35 : vector<8x1xi32>
      %c72_i32_15 = arith.constant 72 : i32
      %39 = vector.broadcast %c72_i32_15 : i32 to vector<8x1xi32>
      %40 = arith.cmpi slt, %38, %39 : vector<8x1xi32>
      %41 = vector.broadcast %40 : vector<8x1xi1> to vector<8x128xi1>
      %42 = vector.broadcast %17 : vector<1x128xi1> to vector<8x128xi1>
      %43 = arith.andi %41, %42 : vector<8x128xi1>
      %cst_16 = arith.constant 0.000000e+00 : f32
      %44 = vector.broadcast %cst_16 : f32 to vector<8x128xf32>
      %45 = arith.select %43, %34, %44 : vector<8x128xi1>, vector<8x128xf32>
      %46 = arith.addf %18, %45 : vector<8x128xf32>
      %c8 = arith.constant 8 : index
      %c0_17 = arith.constant 0 : index
      %47 = vector.load %arg4[%c8, %c0_17] : memref<40x128xf32, #tpu.memory_space<vmem>>, vector<8x128xf32>
      %c8_18 = arith.constant 8 : index
      %c0_19 = arith.constant 0 : index
      %48 = vector.load %arg2[%c8_18, %c0_19] : memref<40x1xf32, #tpu.memory_space<vmem>>, vector<8x1xf32>
      %49 = vector.broadcast %48 : vector<8x1xf32> to vector<8x128xf32>
      %50 = vector.broadcast %2 : vector<1x128xf32> to vector<8x128xf32>
      %51 = arith.cmpf oeq, %49, %50 : vector<8x128xf32>
      %cst_20 = arith.constant 1.000000e+00 : f32
      %52 = vector.broadcast %cst_20 : f32 to vector<8x128xf32>
      %53 = arith.subf %52, %47 : vector<8x128xf32>
      %54 = arith.select %51, %47, %53 : vector<8x128xi1>, vector<8x128xf32>
      %55 = math.log %54 : vector<8x128xf32>
      %cst_21 = arith.constant -1.000000e+02 : f32
      %56 = vector.broadcast %cst_21 : f32 to vector<8x128xf32>
      %57 = arith.maximumf %55, %56 : vector<8x128xf32>
      %cst_22 = arith.constant 5.000000e+01 : f32
      %58 = vector.broadcast %cst_22 : f32 to vector<8x128xf32>
      %59 = arith.subf %58, %57 : vector<8x128xf32>
      %cst_23 = arith.constant -5.000000e-01 : f32
      %60 = vector.broadcast %cst_23 : f32 to vector<8x128xf32>
      %61 = arith.mulf %60, %57 : vector<8x128xf32>
      %62 = arith.select %51, %59, %61 : vector<8x128xi1>, vector<8x128xf32>
      %63 = tpu.iota {dimensions = array<i32: 0>} : vector<8x1xi32>
      %c8_i32 = arith.constant 8 : i32
      %64 = arith.addi %0, %c8_i32 : i32
      %65 = vector.broadcast %64 : i32 to vector<8x1xi32>
      %66 = arith.addi %65, %63 : vector<8x1xi32>
      %c72_i32_24 = arith.constant 72 : i32
      %67 = vector.broadcast %c72_i32_24 : i32 to vector<8x1xi32>
      %68 = arith.cmpi slt, %66, %67 : vector<8x1xi32>
      %69 = vector.broadcast %68 : vector<8x1xi1> to vector<8x128xi1>
      %70 = vector.broadcast %17 : vector<1x128xi1> to vector<8x128xi1>
      %71 = arith.andi %69, %70 : vector<8x128xi1>
      %cst_25 = arith.constant 0.000000e+00 : f32
      %72 = vector.broadcast %cst_25 : f32 to vector<8x128xf32>
      %73 = arith.select %71, %62, %72 : vector<8x128xi1>, vector<8x128xf32>
      %74 = arith.addf %46, %73 : vector<8x128xf32>
      %c16 = arith.constant 16 : index
      %c0_26 = arith.constant 0 : index
      %75 = vector.load %arg4[%c16, %c0_26] : memref<40x128xf32, #tpu.memory_space<vmem>>, vector<8x128xf32>
      %c16_27 = arith.constant 16 : index
      %c0_28 = arith.constant 0 : index
      %76 = vector.load %arg2[%c16_27, %c0_28] : memref<40x1xf32, #tpu.memory_space<vmem>>, vector<8x1xf32>
      %77 = vector.broadcast %76 : vector<8x1xf32> to vector<8x128xf32>
      %78 = vector.broadcast %2 : vector<1x128xf32> to vector<8x128xf32>
      %79 = arith.cmpf oeq, %77, %78 : vector<8x128xf32>
      %cst_29 = arith.constant 1.000000e+00 : f32
      %80 = vector.broadcast %cst_29 : f32 to vector<8x128xf32>
      %81 = arith.subf %80, %75 : vector<8x128xf32>
      %82 = arith.select %79, %75, %81 : vector<8x128xi1>, vector<8x128xf32>
      %83 = math.log %82 : vector<8x128xf32>
      %cst_30 = arith.constant -1.000000e+02 : f32
      %84 = vector.broadcast %cst_30 : f32 to vector<8x128xf32>
      %85 = arith.maximumf %83, %84 : vector<8x128xf32>
      %cst_31 = arith.constant 5.000000e+01 : f32
      %86 = vector.broadcast %cst_31 : f32 to vector<8x128xf32>
      %87 = arith.subf %86, %85 : vector<8x128xf32>
      %cst_32 = arith.constant -5.000000e-01 : f32
      %88 = vector.broadcast %cst_32 : f32 to vector<8x128xf32>
      %89 = arith.mulf %88, %85 : vector<8x128xf32>
      %90 = arith.select %79, %87, %89 : vector<8x128xi1>, vector<8x128xf32>
      %91 = tpu.iota {dimensions = array<i32: 0>} : vector<8x1xi32>
      %c16_i32 = arith.constant 16 : i32
      %92 = arith.addi %0, %c16_i32 : i32
      %93 = vector.broadcast %92 : i32 to vector<8x1xi32>
      %94 = arith.addi %93, %91 : vector<8x1xi32>
      %c72_i32_33 = arith.constant 72 : i32
      %95 = vector.broadcast %c72_i32_33 : i32 to vector<8x1xi32>
      %96 = arith.cmpi slt, %94, %95 : vector<8x1xi32>
      %97 = vector.broadcast %96 : vector<8x1xi1> to vector<8x128xi1>
      %98 = vector.broadcast %17 : vector<1x128xi1> to vector<8x128xi1>
      %99 = arith.andi %97, %98 : vector<8x128xi1>
      %cst_34 = arith.constant 0.000000e+00 : f32
      %100 = vector.broadcast %cst_34 : f32 to vector<8x128xf32>
      %101 = arith.select %99, %90, %100 : vector<8x128xi1>, vector<8x128xf32>
      %102 = arith.addf %74, %101 : vector<8x128xf32>
      %c24 = arith.constant 24 : index
      %c0_35 = arith.constant 0 : index
      %103 = vector.load %arg4[%c24, %c0_35] : memref<40x128xf32, #tpu.memory_space<vmem>>, vector<8x128xf32>
      %c24_36 = arith.constant 24 : index
      %c0_37 = arith.constant 0 : index
      %104 = vector.load %arg2[%c24_36, %c0_37] : memref<40x1xf32, #tpu.memory_space<vmem>>, vector<8x1xf32>
      %105 = vector.broadcast %104 : vector<8x1xf32> to vector<8x128xf32>
      %106 = vector.broadcast %2 : vector<1x128xf32> to vector<8x128xf32>
      %107 = arith.cmpf oeq, %105, %106 : vector<8x128xf32>
      %cst_38 = arith.constant 1.000000e+00 : f32
      %108 = vector.broadcast %cst_38 : f32 to vector<8x128xf32>
      %109 = arith.subf %108, %103 : vector<8x128xf32>
      %110 = arith.select %107, %103, %109 : vector<8x128xi1>, vector<8x128xf32>
      %111 = math.log %110 : vector<8x128xf32>
      %cst_39 = arith.constant -1.000000e+02 : f32
      %112 = vector.broadcast %cst_39 : f32 to vector<8x128xf32>
      %113 = arith.maximumf %111, %112 : vector<8x128xf32>
      %cst_40 = arith.constant 5.000000e+01 : f32
      %114 = vector.broadcast %cst_40 : f32 to vector<8x128xf32>
      %115 = arith.subf %114, %113 : vector<8x128xf32>
      %cst_41 = arith.constant -5.000000e-01 : f32
      %116 = vector.broadcast %cst_41 : f32 to vector<8x128xf32>
      %117 = arith.mulf %116, %113 : vector<8x128xf32>
      %118 = arith.select %107, %115, %117 : vector<8x128xi1>, vector<8x128xf32>
      %119 = tpu.iota {dimensions = array<i32: 0>} : vector<8x1xi32>
      %c24_i32 = arith.constant 24 : i32
      %120 = arith.addi %0, %c24_i32 : i32
      %121 = vector.broadcast %120 : i32 to vector<8x1xi32>
      %122 = arith.addi %121, %119 : vector<8x1xi32>
      %c72_i32_42 = arith.constant 72 : i32
      %123 = vector.broadcast %c72_i32_42 : i32 to vector<8x1xi32>
      %124 = arith.cmpi slt, %122, %123 : vector<8x1xi32>
      %125 = vector.broadcast %124 : vector<8x1xi1> to vector<8x128xi1>
      %126 = vector.broadcast %17 : vector<1x128xi1> to vector<8x128xi1>
      %127 = arith.andi %125, %126 : vector<8x128xi1>
      %cst_43 = arith.constant 0.000000e+00 : f32
      %128 = vector.broadcast %cst_43 : f32 to vector<8x128xf32>
      %129 = arith.select %127, %118, %128 : vector<8x128xi1>, vector<8x128xf32>
      %130 = arith.addf %102, %129 : vector<8x128xf32>
      %c32 = arith.constant 32 : index
      %c0_44 = arith.constant 0 : index
      %131 = vector.load %arg4[%c32, %c0_44] : memref<40x128xf32, #tpu.memory_space<vmem>>, vector<8x128xf32>
      %c32_45 = arith.constant 32 : index
      %c0_46 = arith.constant 0 : index
      %132 = vector.load %arg2[%c32_45, %c0_46] : memref<40x1xf32, #tpu.memory_space<vmem>>, vector<8x1xf32>
      %133 = vector.broadcast %132 : vector<8x1xf32> to vector<8x128xf32>
      %134 = vector.broadcast %2 : vector<1x128xf32> to vector<8x128xf32>
      %135 = arith.cmpf oeq, %133, %134 : vector<8x128xf32>
      %cst_47 = arith.constant 1.000000e+00 : f32
      %136 = vector.broadcast %cst_47 : f32 to vector<8x128xf32>
      %137 = arith.subf %136, %131 : vector<8x128xf32>
      %138 = arith.select %135, %131, %137 : vector<8x128xi1>, vector<8x128xf32>
      %139 = math.log %138 : vector<8x128xf32>
      %cst_48 = arith.constant -1.000000e+02 : f32
      %140 = vector.broadcast %cst_48 : f32 to vector<8x128xf32>
      %141 = arith.maximumf %139, %140 : vector<8x128xf32>
      %cst_49 = arith.constant 5.000000e+01 : f32
      %142 = vector.broadcast %cst_49 : f32 to vector<8x128xf32>
      %143 = arith.subf %142, %141 : vector<8x128xf32>
      %cst_50 = arith.constant -5.000000e-01 : f32
      %144 = vector.broadcast %cst_50 : f32 to vector<8x128xf32>
      %145 = arith.mulf %144, %141 : vector<8x128xf32>
      %146 = arith.select %135, %143, %145 : vector<8x128xi1>, vector<8x128xf32>
      %147 = tpu.iota {dimensions = array<i32: 0>} : vector<8x1xi32>
      %c32_i32 = arith.constant 32 : i32
      %148 = arith.addi %0, %c32_i32 : i32
      %149 = vector.broadcast %148 : i32 to vector<8x1xi32>
      %150 = arith.addi %149, %147 : vector<8x1xi32>
      %c72_i32_51 = arith.constant 72 : i32
      %151 = vector.broadcast %c72_i32_51 : i32 to vector<8x1xi32>
      %152 = arith.cmpi slt, %150, %151 : vector<8x1xi32>
      %153 = vector.broadcast %152 : vector<8x1xi1> to vector<8x128xi1>
      %154 = vector.broadcast %17 : vector<1x128xi1> to vector<8x128xi1>
      %155 = arith.andi %153, %154 : vector<8x128xi1>
      %cst_52 = arith.constant 0.000000e+00 : f32
      %156 = vector.broadcast %cst_52 : f32 to vector<8x128xf32>
      %157 = arith.select %155, %146, %156 : vector<8x128xi1>, vector<8x128xf32>
      %158 = arith.addf %130, %157 : vector<8x128xf32>
      %c0_53 = arith.constant 0 : index
      %c0_54 = arith.constant 0 : index
      %159 = vector.load %arg5[%c0_53, %c0_54] : memref<8x128xf32, #tpu.memory_space<vmem>>, vector<8x128xf32>
      tpu.vector_store %arg5[%c0_53, %c0_54], %158 {strides = array<i32>} : memref<8x128xf32, #tpu.memory_space<vmem>>, vector<8x128xf32>,
    } else {
    }
    %true = arith.constant true
    %10 = arith.xori %7, %true : i1
    %11 = arith.extui %10 : i1 to i32
    %c0_i32_4 = arith.constant 0 : i32
    %12 = arith.cmpi ne, %11, %c0_i32_4 : i32
    scf.if %12 {
      %cst = arith.constant 0.000000e+00 : f32
      %13 = vector.broadcast %cst : f32 to vector<8x128xf32>
      %c0_5 = arith.constant 0 : index
      %c0_6 = arith.constant 0 : index
      %14 = vector.load %arg4[%c0_5, %c0_6] : memref<40x128xf32, #tpu.memory_space<vmem>>, vector<8x128xf32>
      %c0_7 = arith.constant 0 : index
      %c0_8 = arith.constant 0 : index
      %15 = vector.load %arg2[%c0_7, %c0_8] : memref<40x1xf32, #tpu.memory_space<vmem>>, vector<8x1xf32>
      %16 = vector.broadcast %15 : vector<8x1xf32> to vector<8x128xf32>
      %17 = vector.broadcast %2 : vector<1x128xf32> to vector<8x128xf32>
      %18 = arith.cmpf oeq, %16, %17 : vector<8x128xf32>
      %cst_9 = arith.constant 1.000000e+00 : f32
      %19 = vector.broadcast %cst_9 : f32 to vector<8x128xf32>
      %20 = arith.subf %19, %14 : vector<8x128xf32>
      %21 = arith.select %18, %14, %20 : vector<8x128xi1>, vector<8x128xf32>
      %22 = math.log %21 : vector<8x128xf32>
      %cst_10 = arith.constant -1.000000e+02 : f32
      %23 = vector.broadcast %cst_10 : f32 to vector<8x128xf32>
      %24 = arith.maximumf %22, %23 : vector<8x128xf32>
      %cst_11 = arith.constant 5.000000e+01 : f32
      %25 = vector.broadcast %cst_11 : f32 to vector<8x128xf32>
      %26 = arith.subf %25, %24 : vector<8x128xf32>
      %cst_12 = arith.constant -5.000000e-01 : f32
      %27 = vector.broadcast %cst_12 : f32 to vector<8x128xf32>
      %28 = arith.mulf %27, %24 : vector<8x128xf32>
      %29 = arith.select %18, %26, %28 : vector<8x128xi1>, vector<8x128xf32>
      %30 = arith.addf %13, %29 : vector<8x128xf32>
      %c8 = arith.constant 8 : index
      %c0_13 = arith.constant 0 : index
      %31 = vector.load %arg4[%c8, %c0_13] : memref<40x128xf32, #tpu.memory_space<vmem>>, vector<8x128xf32>
      %c8_14 = arith.constant 8 : index
      %c0_15 = arith.constant 0 : index
      %32 = vector.load %arg2[%c8_14, %c0_15] : memref<40x1xf32, #tpu.memory_space<vmem>>, vector<8x1xf32>
      %33 = vector.broadcast %32 : vector<8x1xf32> to vector<8x128xf32>
      %34 = vector.broadcast %2 : vector<1x128xf32> to vector<8x128xf32>
      %35 = arith.cmpf oeq, %33, %34 : vector<8x128xf32>
      %cst_16 = arith.constant 1.000000e+00 : f32
      %36 = vector.broadcast %cst_16 : f32 to vector<8x128xf32>
      %37 = arith.subf %36, %31 : vector<8x128xf32>
      %38 = arith.select %35, %31, %37 : vector<8x128xi1>, vector<8x128xf32>
      %39 = math.log %38 : vector<8x128xf32>
      %cst_17 = arith.constant -1.000000e+02 : f32
      %40 = vector.broadcast %cst_17 : f32 to vector<8x128xf32>
      %41 = arith.maximumf %39, %40 : vector<8x128xf32>
      %cst_18 = arith.constant 5.000000e+01 : f32
      %42 = vector.broadcast %cst_18 : f32 to vector<8x128xf32>
      %43 = arith.subf %42, %41 : vector<8x128xf32>
      %cst_19 = arith.constant -5.000000e-01 : f32
      %44 = vector.broadcast %cst_19 : f32 to vector<8x128xf32>
      %45 = arith.mulf %44, %41 : vector<8x128xf32>
      %46 = arith.select %35, %43, %45 : vector<8x128xi1>, vector<8x128xf32>
      %47 = arith.addf %30, %46 : vector<8x128xf32>
      %c16 = arith.constant 16 : index
      %c0_20 = arith.constant 0 : index
      %48 = vector.load %arg4[%c16, %c0_20] : memref<40x128xf32, #tpu.memory_space<vmem>>, vector<8x128xf32>
      %c16_21 = arith.constant 16 : index
      %c0_22 = arith.constant 0 : index
      %49 = vector.load %arg2[%c16_21, %c0_22] : memref<40x1xf32, #tpu.memory_space<vmem>>, vector<8x1xf32>
      %50 = vector.broadcast %49 : vector<8x1xf32> to vector<8x128xf32>
      %51 = vector.broadcast %2 : vector<1x128xf32> to vector<8x128xf32>
      %52 = arith.cmpf oeq, %50, %51 : vector<8x128xf32>
      %cst_23 = arith.constant 1.000000e+00 : f32
      %53 = vector.broadcast %cst_23 : f32 to vector<8x128xf32>
      %54 = arith.subf %53, %48 : vector<8x128xf32>
      %55 = arith.select %52, %48, %54 : vector<8x128xi1>, vector<8x128xf32>
      %56 = math.log %55 : vector<8x128xf32>
      %cst_24 = arith.constant -1.000000e+02 : f32
      %57 = vector.broadcast %cst_24 : f32 to vector<8x128xf32>
      %58 = arith.maximumf %56, %57 : vector<8x128xf32>
      %cst_25 = arith.constant 5.000000e+01 : f32
      %59 = vector.broadcast %cst_25 : f32 to vector<8x128xf32>
      %60 = arith.subf %59, %58 : vector<8x128xf32>
      %cst_26 = arith.constant -5.000000e-01 : f32
      %61 = vector.broadcast %cst_26 : f32 to vector<8x128xf32>
      %62 = arith.mulf %61, %58 : vector<8x128xf32>
      %63 = arith.select %52, %60, %62 : vector<8x128xi1>, vector<8x128xf32>
      %64 = arith.addf %47, %63 : vector<8x128xf32>
      %c24 = arith.constant 24 : index
      %c0_27 = arith.constant 0 : index
      %65 = vector.load %arg4[%c24, %c0_27] : memref<40x128xf32, #tpu.memory_space<vmem>>, vector<8x128xf32>
      %c24_28 = arith.constant 24 : index
      %c0_29 = arith.constant 0 : index
      %66 = vector.load %arg2[%c24_28, %c0_29] : memref<40x1xf32, #tpu.memory_space<vmem>>, vector<8x1xf32>
      %67 = vector.broadcast %66 : vector<8x1xf32> to vector<8x128xf32>
      %68 = vector.broadcast %2 : vector<1x128xf32> to vector<8x128xf32>
      %69 = arith.cmpf oeq, %67, %68 : vector<8x128xf32>
      %cst_30 = arith.constant 1.000000e+00 : f32
      %70 = vector.broadcast %cst_30 : f32 to vector<8x128xf32>
      %71 = arith.subf %70, %65 : vector<8x128xf32>
      %72 = arith.select %69, %65, %71 : vector<8x128xi1>, vector<8x128xf32>
      %73 = math.log %72 : vector<8x128xf32>
      %cst_31 = arith.constant -1.000000e+02 : f32
      %74 = vector.broadcast %cst_31 : f32 to vector<8x128xf32>
      %75 = arith.maximumf %73, %74 : vector<8x128xf32>
      %cst_32 = arith.constant 5.000000e+01 : f32
      %76 = vector.broadcast %cst_32 : f32 to vector<8x128xf32>
      %77 = arith.subf %76, %75 : vector<8x128xf32>
      %cst_33 = arith.constant -5.000000e-01 : f32
      %78 = vector.broadcast %cst_33 : f32 to vector<8x128xf32>
      %79 = arith.mulf %78, %75 : vector<8x128xf32>
      %80 = arith.select %69, %77, %79 : vector<8x128xi1>, vector<8x128xf32>
      %81 = arith.addf %64, %80 : vector<8x128xf32>
      %c32 = arith.constant 32 : index
      %c0_34 = arith.constant 0 : index
      %82 = vector.load %arg4[%c32, %c0_34] : memref<40x128xf32, #tpu.memory_space<vmem>>, vector<8x128xf32>
      %c32_35 = arith.constant 32 : index
      %c0_36 = arith.constant 0 : index
      %83 = vector.load %arg2[%c32_35, %c0_36] : memref<40x1xf32, #tpu.memory_space<vmem>>, vector<8x1xf32>
      %84 = vector.broadcast %83 : vector<8x1xf32> to vector<8x128xf32>
      %85 = vector.broadcast %2 : vector<1x128xf32> to vector<8x128xf32>
      %86 = arith.cmpf oeq, %84, %85 : vector<8x128xf32>
      %cst_37 = arith.constant 1.000000e+00 : f32
      %87 = vector.broadcast %cst_37 : f32 to vector<8x128xf32>
      %88 = arith.subf %87, %82 : vector<8x128xf32>
      %89 = arith.select %86, %82, %88 : vector<8x128xi1>, vector<8x128xf32>
      %90 = math.log %89 : vector<8x128xf32>
      %cst_38 = arith.constant -1.000000e+02 : f32
      %91 = vector.broadcast %cst_38 : f32 to vector<8x128xf32>
      %92 = arith.maximumf %90, %91 : vector<8x128xf32>
      %cst_39 = arith.constant 5.000000e+01 : f32
      %93 = vector.broadcast %cst_39 : f32 to vector<8x128xf32>
      %94 = arith.subf %93, %92 : vector<8x128xf32>
      %cst_40 = arith.constant -5.000000e-01 : f32
      %95 = vector.broadcast %cst_40 : f32 to vector<8x128xf32>
      %96 = arith.mulf %95, %92 : vector<8x128xf32>
      %97 = arith.select %86, %94, %96 : vector<8x128xi1>, vector<8x128xf32>
      %98 = arith.addf %81, %97 : vector<8x128xf32>
      %c0_41 = arith.constant 0 : index
      %c0_42 = arith.constant 0 : index
      %99 = vector.load %arg5[%c0_41, %c0_42] : memref<8x128xf32, #tpu.memory_space<vmem>>, vector<8x128xf32>
      tpu.vector_store %arg5[%c0_41, %c0_42], %98 {strides = array<i32>} : memref<8x128xf32, #tpu.memory_space<vmem>>, vector<8x128xf32>,
    } else {
    }
    return
  }
  func.func @transform_0(%arg0: i32, %arg1: i32) -> (i32, i32) {
    %c0_i32 = arith.constant 0 : i32
    %c0_i32_0 = arith.constant 0 : i32
    return %arg0, %c0_i32 : i32, i32
  }
  func.func @transform_1(%arg0: i32, %arg1: i32) -> (i32, i32) {
    %c0_i32 = arith.constant 0 : i32
    %c0_i32_0 = arith.constant 0 : i32
    return %c0_i32, %arg1 : i32, i32
  }
  func.func @transform_2(%arg0: i32, %arg1: i32) -> (i32, i32) {
    %c0_i32 = arith.constant 0 : i32
    return %arg0, %arg1 : i32, i32
  }
  func.func @transform_3(%arg0: i32, %arg1: i32) -> (i32, i32) {
    %c0_i32 = arith.constant 0 : i32
    return %arg0, %arg1 : i32, i32
  }
}

</mosaic_0001>

<bundles_post_ra>
// kernel: tpu_custom_call.1
= control target key start
LH: loop header
LB: loop body
LE: loop exit
PB: predicated region body
PF: predicated region fallthrough
CT: control target
= control target key end

     0   :  { %8 = vsyncpa [#allocation3], 0  ;;  %s991_s0 = inlined_call_operand.vmem [shape: f32[72,1], index: 0, kind: input, shape index: {}]   ;;  %s992_s1 = inlined_call_operand.vmem [shape: f32[1,72], index: 1, kind: input, shape index: {}]   ;;  %s993_s2 = inlined_call_operand.vmem [shape: f32[72,72], index: 2, kind: input, shape index: {}]   ;;  %s994_s3 = inlined_call_operand.hbm [shape: f32[16,128], index: 3, kind: output, shape index: {}]  }
   0x1   :  { %10 = vsyncpa [#allocation3 + $0x1], 0  ;;  %s808_s12 = smov 0   ;;  %s810_s13 = smov 0  }
   0x2   :  { %s812_s14 = smov 0   ;;  %s814_s15 = smov 0  }
   0x3   :  { %s816_s16 = smov 0   ;;  %s818_s17 = smov 0  }
   0x4 LB: > { %s624_s18 = sadd.s32 4294967295, %s785_s17   ;;  %s625_s19 = sadd.s32 4294967294, %s785_s17   ;;  %s785_s17 = sphi %s818_s17, %s16_s17   ;;  %s781_s16 = sphi %s816_s16, %s1005_s16   ;;  %s777_s15 = sphi %s814_s15, %s1004_s15   ;;  %s773_s14 = sphi %s812_s14, %s1003_s14   ;;  %s769_s13 = sphi %s810_s13, %s1002_s13   ;;  %s765_s12 = sphi %s808_s12, %s1001_s12  }
   0x5   : > { %s28_s20 = sadd.s32 1, %s781_s16  ;;  %s117_s21 = sadd.s32 1, %s773_s14 }
   0x6   : > { %p30_p0 = scmp.ge.s32.totalorder %s28_s20, 2  ;;  %p127_p1 = scmp.ne.s32.totalorder %s773_s14, %s769_s13 }
   0x7   : > { %p128_p2 = scmp.eq.s32.totalorder %s624_s18, 1  ;;  %p133_p3 = scmp.ne.s32.totalorder %s769_s13, %s765_s12 }
   0x8   : > { %s1007_s20 = smov (%p30_p0, %s28_s20), 0  ;;  %p134_p5 = scmp.eq.s32.totalorder %s625_s19, 1 }
   0x9   : > { %p848_p4 = por %p128_p2, %p127_p1  ;;  %s112_s23 = ssub.s32 %s781_s16, %s1007_s20 }
   0xa   : > { %p629_p6 = scmp.ge.s32.totalorder %s785_s17, 1  ;;  %p115_p7 = scmp.eq.s32.totalorder %s112_s23, 0 }
   0xb   : > { %p855_p8 = por %p134_p5, %p133_p3  ;;  %p195_p9 = scmp.lt.s32.totalorder %s785_s17, 3 }
   0xc   : > { %s861_s25 = scalar_select %p115_p7, %s773_s14, %s117_s21  }
   0xd   : > { %p196_p10 = pnand %p629_p6, %p195_p9 }
   0xe   : > { %s238_s26 = smul.u32 (!%p196_p10), 5, %s777_s15  ;;  %s235_s21 = sand.u32 (!%p196_p10), 1, %s769_s13  }
   0xf   : > { %199 = sbr.rel (%p196_p10) target bundleno = 176 (0xb0), region = 32  ;;  %s630_s23 = sshll.u32 (!%p196_p10), %s235_s21, 3 }
  0x10   : > { %p243_p11 = scmp.lt.s32.totalorder (!%p196_p10), %s238_s26, 8  ;;  %s897_s9 = smul.u32 (!%p196_p10), 40, %s777_s15 }
  0x11   : > { %s237_s29 = scalar_lea.vmem (!%p196_p10), [#allocation2], %s630_s23  ;;  %s513_s5 = scalar_lea.sflag (!%p196_p10), [#allocation3], %s235_s21 }
  0x12   : > { %s335_s10 = sadd.s32 (!%p196_p10), 8, %s897_s9  ;;  %s360_s11 = sadd.s32 (!%p196_p10), 16, %s897_s9 }
  0x13   : > { %s385_s18 = sadd.s32 (!%p196_p10), 24, %s897_s9  ;;  %s410_s19 = sadd.s32 (!%p196_p10), 32, %s897_s9 }
  0x14   : > { %v787_v0 = vmov 0   ;;  %s1009_s26 = smov (!%p243_p11, %s238_s26), 8  ;;  %v873_v8 = vld [vmem:[%s992_s1] ss:$0 sm:$0xff]  ;;  %v283_v23 = vlaneseq  ;;  %v309_v32 = vstv %s897_s9  ;;  %v336_v34 = vstv %s335_s10  ;;  %s727_s10 = scalar_lea.hbm %s994_s3, 16 }
  0x15   : > { %694 = vset.pattern.permute.xlu1 %v787_v0  ;;  %693 = vset.pattern.permute.xlu0 %v787_v0  ;;  %s631_s27 = sshll.u32 %s1009_s26, 3  ;;  %v361_v38 = vstv %s360_s11  ;;  %v386_v44 = vstv %s385_s18  ;;  %v411_v50 = vstv %s410_s19  ;;  %s634_s26 = sshll.u32 %s777_s15, 3 }
  0x16   : > { %695 = vset.pattern.permute.xlu2 %v787_v0  ;;  %s246_s30 = scalar_lea.vmem %s991_s0, %s631_s27  ;;  %s266_s6 = scalar_lea.vmem %s993_s2, %s631_s27  ;;  %v308_v30 = vshrl.u32 %v283_v23, 7  ;;  %v284_v37 = vand.u32 127, %v283_v23 }
  0x17   : > { %v345_v1 = vld [vmem:[%s246_s30 + $0x10] sm:$0xff]  ;;  %v289_v2 = vld [vmem:[%s246_s30] sm:$0xff]  ;;  %v370_v4 = vld [vmem:[%s246_s30 + $0x18] sm:$0xff]  ;;  %s524_s28 = scalar_lea.hbm %s994_s3, %s634_s26 }
  0x18   : > { %348 = vperm.xlu1 %694, %v345_v1   ;;  %292 = vperm.xlu0 %693, %v289_v2   ;;  %v395_v3 = vld [vmem:[%s246_s30 + $0x20] sm:$0xff]  ;;  %v320_v5 = vld [vmem:[%s246_s30 + $0x8] sm:$0xff]  ;;  %v344_v6 = vld [vmem:[%s266_s6 + $0x10] sm:$0xff]  ;;  %v310_v39 = vadd.s32 %v309_v32, %v308_v30  ;;  %v337_v40 = vadd.s32 %v336_v34, %v308_v30  ;;  %v362_v46 = vadd.s32 %v361_v38, %v308_v30  ;;  %vm287_vm5 = vcmp.lt.s32.totalorder %v284_v37, 72  ;;  %s526_s30 = sshll.u32 %s237_s29, 4  ;;  %s528_s4 = sshll.u32 %s524_s28, 4  ;;  %s527_s30 = int_to_ptr.vmem [resolvable:$true] %s526_s30  ;;  %s529_s4 = int_to_ptr.hbm [resolvable:$true] %s528_s4 }
  0x19   : > { %398 = vperm.xlu2 %695, %v395_v3   ;;  %v288_v7 = vld [vmem:[%s266_s6] sm:$0xff]  ;;  %v352_v10 = vsub.f32 1.0, %v344_v6  ;;  %v369_v18 = vld [vmem:[%s266_s6 + $0x18] sm:$0xff]  ;;  %v319_v19 = vld [vmem:[%s266_s6 + $0x8] sm:$0xff]  ;;  %v387_v52 = vadd.s32 %v386_v44, %v308_v30  ;;  %v412_v58 = vadd.s32 %v411_v50, %v308_v30 }
  0x1a   : > { %v394_v9 = vld [vmem:[%s266_s6 + $0x20] sm:$0xff]  ;;  %v299_v11 = vsub.f32 1.0, %v288_v7  ;;  %v377_v21 = vsub.f32 1.0, %v369_v18  ;;  %v327_v22 = vsub.f32 1.0, %v319_v19  ;;  %vm311_vm6 = vcmp.lt.s32.totalorder %v310_v39, 72  ;;  %s721_s6 = sshra.s32 %s529_s4, 4  ;;  %s722_s6 = int_to_ptr.hbm [resolvable:$true] %s721_s6 }
  0x1b   : > { %v402_v15 = vsub.f32 1.0, %v394_v9  ;;  %vm338_vm7 = vcmp.lt.s32.totalorder %v337_v40, 72  ;;  %vm363_vm8 = vcmp.lt.s32.totalorder %v362_v46, 72  ;;  %vm920_vm9 = vmand %vm311_vm6, %vm287_vm5  ;;  %vm388_vm11 = vcmp.lt.s32.totalorder %v387_v52, 72  ;;  %s723_s7 = scalar_lea.hbm %s722_s6, 8  ;;  %p728_p1 = scmp.lt.s32.totalorder %s722_s6, %s994_s3 }
  0x1c   : > { %vm928_vm10 = vmand %vm338_vm7, %vm287_vm5  ;;  %vm413_vm13 = vcmp.lt.s32.totalorder %v412_v58, 72  ;;  %p724_p12 = scmp.ne.s32.totalorder %s722_s6, %s723_s7  ;;  %p729_p2 = scmp.lt.s32.totalorder %s727_s10, %s723_s7 }
  0x1d   : > { %vm366_vm12 = vmand %vm363_vm8, %vm287_vm5 }
  0x1e   : > { %vm391_vm14 = vmand %vm388_vm11, %vm287_vm5  ;;  %p725_p13 = pnand %p724_p12, %p848_p4  ;;  %p730_p3 = por %p729_p2, %p728_p1 }
  0x1f   : > { %vm416_vm15 = vmand %vm413_vm13, %vm287_vm5 }
  0x20   : > { %373 = vperm.xlu1 %694, %v370_v4   ;;  %323 = vperm.xlu0 %693, %v320_v5   ;;  %p726_p0 = pneg %p725_p13 }
  0x22   : > { %p731_p5 = pnand %p730_p3, %p726_p0 }
  0x73   : > { %v875_v12 = vpop.permute.xlu2 %398 }
  0x74   : > { %vm401_vm2 = vcmp.eq.f32.partialorder %v875_v12, %v873_v8 }
  0x75   : > { %v403_v20 = vsel %vm401_vm2, %v394_v9, %v402_v15 }
  0x8a   : > { %v877_v13 = vpop.permute.xlu1 %348  ;;  %v879_v14 = vpop.permute.xlu0 %292 }
  0x8b   : > { %vm351_vm0 = vcmp.eq.f32.partialorder %v877_v13, %v873_v8  ;;  %vm298_vm1 = vcmp.eq.f32.partialorder %v879_v14, %v873_v8 }
  0x8c   : > { %v353_v16 = vsel %vm351_vm0, %v344_v6, %v352_v10  ;;  %v300_v17 = vsel %vm298_vm1, %v288_v7, %v299_v11 }
  0x8d   : > { %697 = vlog2.f32 %v353_v16 }
  0x8e   : > { %699 = vlog2.f32 %v300_v17 }
  0x8f   : > { %701 = vlog2.f32 %v403_v20 }
  0x92   : > { %v899_v24 = vpop.permute.xlu1 %373  ;;  %v901_v25 = vpop.permute.xlu0 %323 }
  0x93   : > { %v698_v26 = vpop.eup %697  ;;  %vm376_vm3 = vcmp.eq.f32.partialorder %v899_v24, %v873_v8  ;;  %vm326_vm4 = vcmp.eq.f32.partialorder %v901_v25, %v873_v8 }
  0x94   : > { %v700_v27 = vpop.eup %699  ;;  %v378_v28 = vsel %vm376_vm3, %v369_v18, %v377_v21  ;;  %v328_v29 = vsel %vm326_vm4, %v319_v19, %v327_v22  ;;  %v355_v33 = vmul.f32 0.6931472, %v698_v26 }
  0x95   : > { %v302_v31 = vmul.f32 0.6931472, %v700_v27  ;;  %703 = vlog2.f32 %v378_v28  ;;  %v702_v35 = vpop.eup %701 }
  0x96   : > { %705 = vlog2.f32 %v328_v29  ;;  %v405_v42 = vmul.f32 0.6931472, %v702_v35  ;;  %v356_v43 = vmax.f32 %v355_v33, -100.0 }
  0x97   : > { %v303_v36 = vmax.f32 %v302_v31, -100.0 }
  0x98   : > { %v406_v54 = vmax.f32 %v405_v42, -100.0  ;;  %v357_v55 = vsub.f32 50.0, %v356_v43  ;;  %v358_v56 = vmul.f32 -0.5, %v356_v43 }
  0x99   : > { %v304_v47 = vsub.f32 50.0, %v303_v36  ;;  %v305_v48 = vmul.f32 -0.5, %v303_v36 }
  0x9a   : > { %v407_v2 = vsub.f32 50.0, %v406_v54  ;;  %v408_v3 = vmul.f32 -0.5, %v406_v54  ;;  %v359_v4 = vsel %vm351_vm0, %v357_v55, %v358_v56 }
  0x9b   : > { %v704_v41 = vpop.eup %703  ;;  %v306_v60 = vsel %vm298_vm1, %v304_v47, %v305_v48  ;;  %v367_v11 = vsel %vm366_vm12, %v359_v4, 0.0 }
  0x9c   : > { %v706_v45 = vpop.eup %705  ;;  %v380_v49 = vmul.f32 0.6931472, %v704_v41  ;;  %v317_v6 = vsel %vm920_vm9, %v306_v60, 0.0  ;;  %v409_v13 = vsel %vm401_vm2, %v407_v2, %v408_v3 }
  0x9d   : > { %v330_v51 = vmul.f32 0.6931472, %v706_v45  ;;  %v417_v17 = vsel %vm416_vm15, %v409_v13, 0.0 }
  0x9e   : > { %v381_v53 = vmax.f32 %v380_v49, -100.0 }
  0x9f   : > { %v331_v57 = vmax.f32 %v330_v51, -100.0 }
  0xa0   : > { %v382_v61 = vsub.f32 50.0, %v381_v53  ;;  %v383_v62 = vmul.f32 -0.5, %v381_v53 }
  0xa1   : > { %v332_v0 = vsub.f32 50.0, %v331_v57  ;;  %v333_v1 = vmul.f32 -0.5, %v331_v57 }
  0xa2   : > { %v384_v9 = vsel %vm376_vm3, %v382_v61, %v383_v62 }
  0xa3   : > { %v334_v5 = vsel %vm326_vm4, %v332_v0, %v333_v1  ;;  %v392_v15 = vsel %vm391_vm14, %v384_v9, 0.0 }
  0xa4   : > { %v342_v7 = vsel %vm928_vm10, %v334_v5, 0.0 }
  0xa5   : > { %v343_v10 = vadd.f32 %v342_v7, %v317_v6 }
  0xa7   : > { %v368_v14 = vadd.f32 %v367_v11, %v343_v10 }
  0xa9   : > { %v393_v16 = vadd.f32 %v392_v15, %v368_v14 }
  0xab   : > { %v418_v18 = vadd.f32 %v417_v17, %v393_v16 }
  0xad   : > { %419 = vst [vmem:[%s237_s29] sm:$0xff] %v418_v18 }
  0xae   : > { %734 = shalt.err (!%p731_p5)
}
  0xaf   : > { %637 = dma.vmem_to_hbm [thread:$0]  (%p848_p4), %s527_s30, 128, %s529_s4, %s513_s5  }
  0xb0 PF: > { %p643_p6 = scmp.ge.s32.totalorder %s785_s17, 2  ;;  %s540_s19 = sand.u32 1, %s765_s12  }
  0xb1   : > { %s541_s21 = scalar_lea.sflag [#allocation3], %s540_s19 }
  0xb2   : > { %p640_p7 = pnand %p643_p6, %p855_p8 }
  0xb4   : > { %p641_p9 = pneg %p640_p7 }
  0xb6   : > { %760 = dma.done.wait (%p641_p9), %s541_s21, 128  }
  0xb7   : > { %762 = vsyncadd (%p641_p9), %s541_s21, 4294967168  ;;  %s16_s17 = sadd.s32 1, %s785_s17   ;;  %s1001_s12 = smov %s769_s13 }
  0xb8   : > { %p13_p10 = scmp.ge.s32.totalorder %s16_s17, 4   ;;  %s1002_s13 = smov %s773_s14 }
  0xb9   : > { %s1003_s14 = smov %s861_s25  ;;  %s1004_s15 = smov %s781_s16 }
  0xba   : > { %s1005_s16 = smov %s1007_s20  ;;  %15 = sbr.rel (!%p13_p10) target bundleno = 4 (0x4), region = 81 }
  0xbf   :  { %547 = vsyncpa [#allocation3], 1 }
  0xc0   :  { %549 = vsyncpa [#allocation3 + $0x1], 1 }

</bundles_post_ra>
